<compile_context>
chip_gen: v6e
topology: v6e:2x2x1
jax: 0.10.0
libtpu: 0.0.40
codegen_flags: <defaults>
</compile_context>

<pallas_src>
import functools

import jax
import jax.numpy as jnp
from jax.experimental import pallas as pl
from jax.experimental.pallas import tpu as pltpu

_MIB = 1024 * 1024


def _round_up(x, m):
    return ((x + m - 1) // m) * m


def _sublane_multiple(dtype):
    return {4: 8, 2: 16, 1: 32}.get(jnp.dtype(dtype).itemsize, 8)


_VMEM_BUDGET = None


def _vmem_budget_bytes():
    """Generation-aware per-kernel VMEM budget with headroom."""
    global _VMEM_BUDGET
    if _VMEM_BUDGET is None:
        cap = 64 * _MIB  # conservative default = v7x physical VMEM per core
        try:
            info = pltpu.get_tpu_info()
            c = getattr(info, "vmem_capacity_bytes", None)
            if c:
                cap = int(c)
        except Exception:
            pass
        # Leave Mosaic scratch/semaphore headroom; cap 128-MiB parts at 100 MiB.
        _VMEM_BUDGET = min(cap - 8 * _MIB, 100 * _MIB)
    return _VMEM_BUDGET


def _pick_hidden_tile(H, target):
    """Largest multiple of 256 (preferred) or 128 dividing H and <= target."""
    if H <= target:
        return H
    for step in (256, 128):
        if H % step != 0:
            continue
        t = (target // step) * step
        while t >= step:
            if H % t == 0:
                return t
            t -= step
    return H


def _fused_vmem_estimate(tm, Dp, Hp, xb, wb):
    est = (2 * tm * Dp * xb            # x tile (double-buffered)
           + 2 * Dp * (2 * Hp) * wb    # fused up/gate weights (2 buffers, conservative)
           + 2 * (2 * Hp) * wb         # fused bias
           + 2 * Hp * Dp * wb          # w_down
           + 2 * Dp * wb               # b_down
           + 2 * tm * Dp * xb          # output tile
           + 3 * tm * Hp * 4           # ug (up+gate) f32 + hact f32 intermediates
           + tm * Dp * 4)              # f32 result before cast
    return int(est * 1.15)


def _tiled_vmem_estimate(tm, Dp, th, xb, wb):
    est = (2 * tm * Dp * xb            # x tile
           + 2 * 2 * Dp * th * wb      # up + gate weight chunks
           + 2 * 2 * th * wb           # up + gate bias chunks
           + 2 * th * Dp * wb          # w_down chunk
           + 2 * Dp * wb               # b_down
           + 2 * tm * Dp * xb          # output tile
           + tm * Dp * 4               # f32 accumulator scratch
           + 3 * tm * th * 4)          # up / gate / hact intermediates
    return int(est * 1.15)


# ---------------------------------------------------------------------------
# Kernels
# ---------------------------------------------------------------------------
def mlp_fused_kernel(x_ref, w_ug_ref, b_ug_ref, w_down_ref, b_down_ref, o_ref):
    """Single-shot SwiGLU MLP for one row tile; weights fully VMEM-resident."""
    Hp = w_down_ref.shape[0]
    x = x_ref[...]                                         # (tm, Dp), native dtype

    # Fused up|gate projection: one MXU matmul, f32 accumulation.
    ug = jnp.dot(x, w_ug_ref[...], preferred_element_type=jnp.float32)
    ug = ug + b_ug_ref[...].astype(jnp.float32)            # (tm, 2*Hp) f32

    up = ug[:, :Hp]                                        # static lane-aligned slices
    gate = ug[:, Hp:]
    hact = (up * jax.nn.sigmoid(up)) * gate                # SiLU(up) * gate, f32

    out = jnp.dot(hact.astype(w_down_ref.dtype), w_down_ref[...],
                  preferred_element_type=jnp.float32)
    out = out + b_down_ref[...].astype(jnp.float32)
    # dropout(p=0.0) is identity.
    o_ref[...] = out.astype(o_ref.dtype)


def mlp_tiled_kernel(x_ref, w_up_ref, b_up_ref, w_gate_ref, b_gate_ref,
                     w_down_ref, b_down_ref, o_ref, acc_ref):
    """One (row-tile, hidden-chunk) step with f32 accumulation over H chunks."""
    h = pl.program_id(1)

    @pl.when(h == 0)
    def _init():
        acc_ref[...] = jnp.zeros_like(acc_ref)

    x = x_ref[...]
    up = jnp.dot(x, w_up_ref[...], preferred_element_type=jnp.float32)
    up = up + b_up_ref[...].astype(jnp.float32)
    gate = jnp.dot(x, w_gate_ref[...], preferred_element_type=jnp.float32)
    gate = gate + b_gate_ref[...].astype(jnp.float32)

    # Exact per hidden chunk (H is tiled, not the D reduction).
    hact = (up * jax.nn.sigmoid(up)) * gate

    acc_ref[...] += jnp.dot(hact.astype(w_down_ref.dtype), w_down_ref[...],
                            preferred_element_type=jnp.float32)

    @pl.when(h == pl.num_programs(1) - 1)
    def _finalize():
        out = acc_ref[...] + b_down_ref[...].astype(jnp.float32)
        o_ref[...] = out.astype(o_ref.dtype)


# ---------------------------------------------------------------------------
# Parameter prep (done ONCE, outside the per-call hot path)
# ---------------------------------------------------------------------------
def prepare_mlp_params(w_up_pt, b_up, w_gate_pt, b_gate, w_down_pt, b_down,
                       dtype=None):
    """PyTorch-layout weights (out, in) -> padded, transposed, fused arrays.

    Returns dict with:
      w_ug   (Dp, 2*Hp)  = [w_up.T | w_gate.T], zero-padded
      b_ug   (1, 2*Hp)   = [b_up | b_gate], zero-padded
      w_down (Hp, Dp), b_down (1, Dp)
    Zero padding is numerically inert: padded D columns multiply padded-zero x
    columns; padded H columns have zero weight+bias so silu(0)*gate = 0.
    """
    H, D = w_up_pt.shape
    Dp = _round_up(D, 128)
    Hp = _round_up(H, 128)

    w_up = jnp.pad(jnp.asarray(w_up_pt).T, ((0, Dp - D), (0, Hp - H)))
    w_gate = jnp.pad(jnp.asarray(w_gate_pt).T, ((0, Dp - D), (0, Hp - H)))
    w_ug = jnp.concatenate([w_up, w_gate], axis=1)              # (Dp, 2*Hp)
    b_ug = jnp.concatenate([jnp.pad(jnp.asarray(b_up), (0, Hp - H)),
                            jnp.pad(jnp.asarray(b_gate), (0, Hp - H))]
                           ).reshape(1, 2 * Hp)
    w_down = jnp.pad(jnp.asarray(w_down_pt).T, ((0, Hp - H), (0, Dp - D)))
    b_down = jnp.pad(jnp.asarray(b_down), (0, Dp - D)).reshape(1, Dp)

    if dtype is not None:
        w_ug = w_ug.astype(dtype)
        b_ug = b_ug.astype(dtype)
        w_down = w_down.astype(dtype)
        b_down = b_down.astype(dtype)
    return dict(w_ug=w_ug, b_ug=b_ug, w_down=w_down, b_down=b_down)


# ---------------------------------------------------------------------------
# Forward
# ---------------------------------------------------------------------------
@functools.partial(jax.jit, static_argnames=("tm_target", "force_th"))
def mlp_forward(x2d, w_ug, b_ug, w_down, b_down, *, tm_target=512, force_th=None):
    """x2d: (M, D) activations. Weights pre-padded/fused via prepare_mlp_params."""
    M, D = x2d.shape
    Hp, Dp = w_down.shape
    assert w_ug.shape == (Dp, 2 * Hp)

    xb = jnp.dtype(x2d.dtype).itemsize
    wb = jnp.dtype(w_ug.dtype).itemsize
    sub = _sublane_multiple(x2d.dtype)
    budget = _vmem_budget_bytes()

    # ---- row tile -------------------------------------------------------
    tm = min(tm_target, _round_up(M, sub))
    if tm >= 256:
        tm = (tm // 256) * 256            # 256x256 MXU alignment (v6e/v7x)
    tm = max(tm, sub)

    use_fused = force_th is None
    if use_fused:
        # Shrink tm until the fully-resident-weights footprint fits the budget.
        while tm > sub and _fused_vmem_estimate(tm, Dp, Hp, xb, wb) > budget:
            tm = max(_round_up(tm // 2, sub), sub)
        if _fused_vmem_estimate(tm, Dp, Hp, xb, wb) > budget:
            use_fused = False             # weights too big -> tile the hidden axis

    if not use_fused:
        th = force_th if force_th is not None else _pick_hidden_tile(Hp, 1024)
        nh = Hp // th
        # Weights stream once per row tile here, so push tm toward the compute
        # roofline (>=768 when M and VMEM allow).
        tm = min(max(tm_target, 768), _round_up(M, sub))
        if tm >= 256:
            tm = (tm // 256) * 256
        tm = max(tm, sub)
        while tm > sub and _tiled_vmem_estimate(tm, Dp, th, xb, wb) > budget:
            tm = max(_round_up(tm // 2, sub), sub)

    # v7x megacore heuristic: avoid a length-1 "parallel" axis for big tiles.
    Mp = _round_up(M, tm)
    if Mp // tm == 1 and tm >= 256:
        tm //= 2
        Mp = _round_up(M, tm)

    # ---- pad activations only (weights were pre-padded once) -------------
    if Mp != M or Dp != D:
        x2d = jnp.pad(x2d, ((0, Mp - M), (0, Dp - D)))

    if use_fused:
        est = _fused_vmem_estimate(tm, Dp, Hp, xb, wb)
        vmem_limit = int(min(max(est, 32 * _MIB), budget))
        out = pl.pallas_call(
            mlp_fused_kernel,
            out_shape=jax.ShapeDtypeStruct((Mp, Dp), x2d.dtype),
            grid_spec=pltpu.PrefetchScalarGridSpec(
                num_scalar_prefetch=0,
                grid=(Mp // tm,),
                in_specs=[
                    pl.BlockSpec((tm, Dp), lambda i: (i, 0)),        # x rows
                    # Grid-invariant weight blocks: DMA'd once per kernel.
                    pl.BlockSpec((Dp, 2 * Hp), lambda i: (0, 0)),    # fused up|gate W
                    pl.BlockSpec((1, 2 * Hp), lambda i: (0, 0)),     # fused up|gate b
                    pl.BlockSpec((Hp, Dp), lambda i: (0, 0)),        # w_down
                    pl.BlockSpec((1, Dp), lambda i: (0, 0)),         # b_down
                ],
                out_specs=pl.BlockSpec((tm, Dp), lambda i: (i, 0)),
            ),
            compiler_params=pltpu.CompilerParams(
                dimension_semantics=("parallel",),
                vmem_limit_bytes=vmem_limit),
        )(x2d, w_ug, b_ug, w_down, b_down)
    else:
        est = _tiled_vmem_estimate(tm, Dp, th, xb, wb)
        vmem_limit = int(min(max(est, 32 * _MIB), budget))
        # up chunk h lives in column-blocks [h], gate chunk h in [nh + h] of w_ug.
        out = pl.pallas_call(
            mlp_tiled_kernel,
            out_shape=jax.ShapeDtypeStruct((Mp, Dp), x2d.dtype),
            grid_spec=pltpu.PrefetchScalarGridSpec(
                num_scalar_prefetch=0,
                grid=(Mp // tm, nh),
                in_specs=[
                    pl.BlockSpec((tm, Dp), lambda i, h: (i, 0)),       # x rows
                    pl.BlockSpec((Dp, th), lambda i, h: (0, h)),       # up W chunk
                    pl.BlockSpec((1, th), lambda i, h: (0, h)),        # up b chunk
                    pl.BlockSpec((Dp, th), lambda i, h: (0, nh + h)),  # gate W chunk
                    pl.BlockSpec((1, th), lambda i, h: (0, nh + h)),   # gate b chunk
                    pl.BlockSpec((th, Dp), lambda i, h: (h, 0)),       # w_down chunk
                    pl.BlockSpec((1, Dp), lambda i, h: (0, 0)),        # b_down
                ],
                out_specs=pl.BlockSpec((tm, Dp), lambda i, h: (i, 0)),
                scratch_shapes=[pltpu.VMEM((tm, Dp), jnp.float32)],
            ),
            compiler_params=pltpu.CompilerParams(
                dimension_semantics=("parallel", "arbitrary"),
                vmem_limit_bytes=vmem_limit),
        )(x2d, w_ug, b_ug, w_ug, b_ug, w_down, b_down)

    return out[:M, :D]


# ---------------------------------------------------------------------------
# Test harness
# ---------------------------------------------------------------------------
def init_linear(key, fan_in, fan_out, dtype=jnp.float32):
    """Deterministic PyTorch-style nn.Linear init: W (out,in), b (out,)."""
    kw, kb = jax.random.split(key)
    bound = 1.0 / (fan_in ** 0.5)
    w = jax.random.uniform(kw, (fan_out, fan_in), dtype, -bound, bound)
    b = jax.random.uniform(kb, (fan_out,), dtype, -bound, bound)
    return w, b


def reference_mlp(x, w_up, b_up, w_gate, b_gate, w_down, b_down):
    """Pure-JAX f32 reference mirroring the PyTorch forward (W in (out,in) form)."""
    f32 = jnp.float32
    x = x.astype(f32)
    up = x @ w_up.T.astype(f32) + b_up.astype(f32)
    gate = x @ w_gate.T.astype(f32) + b_gate.astype(f32)
    h = (up * jax.nn.sigmoid(up)) * gate
    return h @ w_down.T.astype(f32) + b_down.astype(f32)


def run_case(key, batch, seq, n_embd, *, dtype=jnp.float32, force_th=None,
             atol=1e-4, rtol=1e-4):
    hidden = 4 * n_embd
    kx, k_up, k_gate, k_down = jax.random.split(key, 4)

    x = jax.random.normal(kx, (batch, seq, n_embd), jnp.float32).astype(dtype)
    w_up_pt, b_up = init_linear(k_up, n_embd, hidden)        # up_c_proj
    w_gate_pt, b_gate = init_linear(k_gate, n_embd, hidden)  # gate_c_proj
    w_down_pt, b_down = init_linear(k_down, hidden, n_embd)  # down_c_proj

    # One-time parameter prep (transpose + pad + fuse), outside the hot path.
    params = prepare_mlp_params(w_up_pt, b_up, w_gate_pt, b_gate,
                                w_down_pt, b_down, dtype=dtype)

    x2d = x.reshape(batch * seq, n_embd)
    out2d = mlp_forward(x2d, params["w_ug"], params["b_ug"],
                        params["w_down"], params["b_down"],
                        force_th=force_th)
    out = out2d.reshape(batch, seq, n_embd)
    jax.block_until_ready(out)

    ref = reference_mlp(
        x2d, w_up_pt.astype(dtype), b_up.astype(dtype),
        w_gate_pt.astype(dtype), b_gate.astype(dtype),
        w_down_pt.astype(dtype), b_down.astype(dtype),
    ).reshape(batch, seq, n_embd)
    err = float(jnp.max(jnp.abs(out.astype(jnp.float32) - ref)))
    assert jnp.allclose(out.astype(jnp.float32), ref, atol=atol, rtol=rtol), err


if __name__ == "__main__":
    key = jax.random.PRNGKey(0)
    k1, k2, k3, k4 = jax.random.split(key, 4)

    # Case 1: lane-aligned config (D=128, H=512) -> fused single-shot path,
    # weights DMA'd once (grid-invariant BlockSpecs).
    run_case(k1, batch=2, seq=8, n_embd=128)

    # Case 2: tiny n_embd=32 (hidden=128) -> exercises the D->128 lane padding.
    run_case(k2, batch=2, seq=8, n_embd=32)

    # Case 3: force the hidden-tiled fallback path (th=256 over H=512) ->
    # exercises the f32 accumulator and the fused-weight column-block indexing.
    run_case(k3, batch=2, seq=8, n_embd=128, force_th=256)

    # Case 4: bf16 weights/activations (deployment dtype), f32 MXU accumulation.
    run_case(k4, batch=2, seq=8, n_embd=128, dtype=jnp.bfloat16,
             atol=5e-2, rtol=5e-2)

    print("KERNEL_OK")
</pallas_src>

<mosaic_0001>
module attributes {stable_mosaic.version = 11 : i64} {
  func.func @mlp_fused_kernel(%arg0: i32, %arg1: memref<16x128xf32, #tpu.memory_space<vmem>>, %arg2: memref<128x1024xf32, #tpu.memory_space<vmem>>, %arg3: memref<1x1024xf32, #tpu.memory_space<vmem>>, %arg4: memref<512x128xf32, #tpu.memory_space<vmem>>, %arg5: memref<1x128xf32, #tpu.memory_space<vmem>>, %arg6: memref<16x128xf32, #tpu.memory_space<vmem>>) attributes {dimension_semantics = [#tpu.dimension_semantics<parallel>], iteration_bounds = array<i64: 1>, scalar_prefetch = 0 : i64, scratch_operands = 0 : i64, tpu.core_type = #tpu.core_type<tc>, window_params = [{transform_indices = @transform_0, window_bounds = array<i64: 16, 128>}, {pipeline_mode = #tpu.pipeline_mode<synchronous>, transform_indices = @transform_1, window_bounds = array<i64: 128, 1024>}, {pipeline_mode = #tpu.pipeline_mode<synchronous>, transform_indices = @transform_2, window_bounds = array<i64: 1, 1024>}, {pipeline_mode = #tpu.pipeline_mode<synchronous>, transform_indices = @transform_3, window_bounds = array<i64: 512, 128>}, {pipeline_mode = #tpu.pipeline_mode<synchronous>, transform_indices = @transform_4, window_bounds = array<i64: 1, 128>}, {transform_indices = @transform_5, window_bounds = array<i64: 16, 128>}]} {
    %c0 = arith.constant 0 : index
    %c0_0 = arith.constant 0 : index
    %0 = vector.load %arg1[%c0, %c0_0] : memref<16x128xf32, #tpu.memory_space<vmem>>, vector<16x128xf32>
    %c0_1 = arith.constant 0 : index
    %c0_2 = arith.constant 0 : index
    %1 = vector.load %arg2[%c0_1, %c0_2] : memref<128x1024xf32, #tpu.memory_space<vmem>>, vector<128x1024xf32>
    %cst = arith.constant dense<0.000000e+00> : vector<16x1024xf32>
    %2 = tpu.matmul %0, %1, %cst {dimension_numbers = #tpu.dot_dimension_numbers<[1], [0], [0], [1], [0, 0, 1, 1], [], []>} : vector<16x128xf32>, vector<128x1024xf32>, vector<16x1024xf32> -> vector<16x1024xf32>
    %c0_3 = arith.constant 0 : index
    %c0_4 = arith.constant 0 : index
    %3 = vector.load %arg3[%c0_3, %c0_4] : memref<1x1024xf32, #tpu.memory_space<vmem>>, vector<1x1024xf32>
    %4 = vector.broadcast %3 : vector<1x1024xf32> to vector<16x1024xf32>
    %5 = arith.addf %2, %4 : vector<16x1024xf32>
    %6 = vector.extract_strided_slice %5 {offsets = [0, 0], sizes = [16, 512], strides = [1, 1]} : vector<16x1024xf32> to vector<16x512xf32>
    %7 = vector.extract_strided_slice %5 {offsets = [0, 512], sizes = [16, 512], strides = [1, 1]} : vector<16x1024xf32> to vector<16x512xf32>
    %8 = arith.negf %6 : vector<16x512xf32>
    %9 = math.exp %8 : vector<16x512xf32>
    %cst_5 = arith.constant 1.000000e+00 : f32
    %10 = vector.broadcast %cst_5 : f32 to vector<16x512xf32>
    %11 = arith.addf %10, %9 : vector<16x512xf32>
    %12 = arith.divf %10, %11 : vector<16x512xf32>
    %13 = arith.mulf %6, %12 : vector<16x512xf32>
    %14 = arith.mulf %13, %7 : vector<16x512xf32>
    %c0_6 = arith.constant 0 : index
    %c0_7 = arith.constant 0 : index
    %15 = vector.load %arg4[%c0_6, %c0_7] : memref<512x128xf32, #tpu.memory_space<vmem>>, vector<512x128xf32>
    %cst_8 = arith.constant dense<0.000000e+00> : vector<16x128xf32>
    %16 = tpu.matmul %14, %15, %cst_8 {dimension_numbers = #tpu.dot_dimension_numbers<[1], [0], [0], [1], [0, 0, 1, 1], [], []>} : vector<16x512xf32>, vector<512x128xf32>, vector<16x128xf32> -> vector<16x128xf32>
    %c0_9 = arith.constant 0 : index
    %c0_10 = arith.constant 0 : index
    %17 = vector.load %arg5[%c0_9, %c0_10] : memref<1x128xf32, #tpu.memory_space<vmem>>, vector<1x128xf32>
    %18 = vector.broadcast %17 : vector<1x128xf32> to vector<16x128xf32>
    %19 = arith.addf %16, %18 : vector<16x128xf32>
    %c0_11 = arith.constant 0 : index
    %c0_12 = arith.constant 0 : index
    %20 = vector.load %arg6[%c0_11, %c0_12] : memref<16x128xf32, #tpu.memory_space<vmem>>, vector<16x128xf32>
    tpu.vector_store %arg6[%c0_11, %c0_12], %19 {strides = array<i32>} : memref<16x128xf32, #tpu.memory_space<vmem>>, vector<16x128xf32>,
    return
  }
  func.func @transform_0(%arg0: i32) -> (i32, i32) {
    %c0_i32 = arith.constant 0 : i32
    %c0_i32_0 = arith.constant 0 : i32
    return %arg0, %c0_i32 : i32, i32
  }
  func.func @transform_1(%arg0: i32) -> (i32, i32) {
    %c0_i32 = arith.constant 0 : i32
    %c0_i32_0 = arith.constant 0 : i32
    %c0_i32_1 = arith.constant 0 : i32
    return %c0_i32, %c0_i32_0 : i32, i32
  }
  func.func @transform_2(%arg0: i32) -> (i32, i32) {
    %c0_i32 = arith.constant 0 : i32
    %c0_i32_0 = arith.constant 0 : i32
    %c0_i32_1 = arith.constant 0 : i32
    return %c0_i32, %c0_i32_0 : i32, i32
  }
  func.func @transform_3(%arg0: i32) -> (i32, i32) {
    %c0_i32 = arith.constant 0 : i32
    %c0_i32_0 = arith.constant 0 : i32
    %c0_i32_1 = arith.constant 0 : i32
    return %c0_i32, %c0_i32_0 : i32, i32
  }
  func.func @transform_4(%arg0: i32) -> (i32, i32) {
    %c0_i32 = arith.constant 0 : i32
    %c0_i32_0 = arith.constant 0 : i32
    %c0_i32_1 = arith.constant 0 : i32
    return %c0_i32, %c0_i32_0 : i32, i32
  }
  func.func @transform_5(%arg0: i32) -> (i32, i32) {
    %c0_i32 = arith.constant 0 : i32
    %c0_i32_0 = arith.constant 0 : i32
    return %arg0, %c0_i32 : i32, i32
  }
}

</mosaic_0001>

<bundles_post_ra>
// kernel: mlp_forward.1
= control target key start
LH: loop header
LB: loop body
LE: loop exit
PB: predicated region body
PF: predicated region fallthrough
CT: control target
= control target key end

     0   :  { %10 = vsyncpa [#allocation3], 0  ;;  %s1234_s0 = inlined_call_operand.hbm [shape: f32[16,128], index: 0, kind: input, shape index: {}]   ;;  %s1235_s1 = inlined_call_operand.hbm [shape: f32[128,1024], index: 1, kind: input, shape index: {}]   ;;  %s1236_s2 = inlined_call_operand.hbm [shape: f32[1,1024], index: 2, kind: input, shape index: {}]   ;;  %s1237_s3 = inlined_call_operand.hbm [shape: f32[512,128], index: 3, kind: input, shape index: {}]   ;;  %s1238_s4 = inlined_call_operand.vmem [shape: f32[1,128], index: 4, kind: input, shape index: {}]   ;;  %s1239_s5 = inlined_call_operand.hbm [shape: f32[16,128], index: 5, kind: output, shape index: {}]  }
   0x1   :  { %11 = vsyncpa [#allocation6], 0 }
   0x2   :  { %12 = vsyncpa [#allocation9], 0 }
   0x3   :  { %13 = vsyncpa [#allocation4], 0  ;;  %s1095_s18 = smov [#allocation5]  }
   0x4   :  { %s31_s19 = sshll.u32 %s1095_s18, 4  ;;  %s32_s19 = int_to_ptr.vmem [resolvable:$true] %s31_s19 }
   0x5   :  { %s995_s20 = scalar_lea.vmem %s32_s19, 16384  ;;  %p1000_p1 = scmp.lt.s32.totalorder %s32_s19, %s32_s19 }
   0x6   :  { %p996_p0 = scmp.ne.s32.totalorder %s32_s19, %s995_s20  ;;  %p1001_p2 = scmp.lt.s32.totalorder %s995_s20, %s995_s20 }
   0x8   :  { %p1002_p3 = por %p1001_p2, %p1000_p1 }
   0xa   :  { %p1003_p4 = pnand %p1002_p3, %p996_p0 }
   0xc   :  { %1006 = shalt.err (!%p1003_p4)
}
   0xd   :  { %s1096_s21 = smov 1024   ;;  %s1097_s22 = smov 64  }
   0xe   :  { %37 = dma.hbm_to_vmem [thread:$0]  %s1235_s1, 16384, %s32_s19, [#allocation6], %s1096_s21, %s1096_s21, %s1097_s22  }
   0xf   :  { %s1098_s25 = smov [#allocation2]  }
  0x10   :  { %s19_s26 = sshll.u32 %s1098_s25, 4  ;;  %s20_s26 = int_to_ptr.vmem [resolvable:$true] %s19_s26 }
  0x11   :  { %s1015_s27 = scalar_lea.vmem %s20_s26, 256  ;;  %p1020_p6 = scmp.lt.s32.totalorder %s20_s26, %s20_s26 }
  0x12   :  { %p1016_p5 = scmp.ne.s32.totalorder %s20_s26, %s1015_s27  ;;  %p1021_p7 = scmp.lt.s32.totalorder %s1015_s27, %s1015_s27 }
  0x14   :  { %p1022_p8 = por %p1021_p7, %p1020_p6 }
  0x16   :  { %p1023_p9 = pnand %p1022_p8, %p1016_p5 }
  0x18   :  { %1026 = shalt.err (!%p1023_p9)
}
  0x19   :  { %s1099_s28 = smov 128   ;;  %s1100_s29 = smov 8  }
  0x1a   :  { %25 = dma.hbm_to_vmem [thread:$0]  %s1234_s0, 256, %s20_s26, [#allocation3], %s1099_s28, %s1099_s28, %s1100_s29  }
  0x1b   :  { %s1101_s1 = smov [#allocation7]   ;;  %s1102_s8 = smov [#allocation8]  }
  0x1c   :  { %s44_s7 = sshll.u32 %s1101_s1, 4  ;;  %s53_s9 = sshll.u32 %s1102_s8, 4  ;;  %s45_s7 = int_to_ptr.vmem [resolvable:$true] %s44_s7  ;;  %s54_s9 = int_to_ptr.vmem [resolvable:$true] %s53_s9 }
  0x1d   :  { %s1035_s10 = scalar_lea.vmem %s45_s7, 128  ;;  %p1040_p11 = scmp.lt.s32.totalorder %s45_s7, %s45_s7 }
  0x1e   :  { %p1036_p10 = scmp.ne.s32.totalorder %s45_s7, %s1035_s10  ;;  %p1041_p12 = scmp.lt.s32.totalorder %s1035_s10, %s1035_s10 }
  0x20   :  { %p1042_p13 = por %p1041_p12, %p1040_p11 }
  0x22   :  { %p1043_p0 = pnand %p1042_p13, %p1036_p10 }
  0x24   :  { %1046 = shalt.err (!%p1043_p0)
}
  0x25   :  { %47 = dma.hbm_to_vmem [thread:$0]  %s1236_s2, 128, %s45_s7, [#allocation6]  }
  0x26   :  { %s1055_s13 = scalar_lea.vmem %s54_s9, 8192  ;;  %p1060_p2 = scmp.lt.s32.totalorder %s54_s9, %s54_s9 }
  0x27   :  { %p1056_p1 = scmp.ne.s32.totalorder %s54_s9, %s1055_s13  ;;  %p1061_p3 = scmp.lt.s32.totalorder %s1055_s13, %s1055_s13 }
  0x29   :  { %p1062_p4 = por %p1061_p3, %p1060_p2 }
  0x2b   :  { %p1063_p5 = pnand %p1062_p4, %p1056_p1 }
  0x2d   :  { %1066 = shalt.err (!%p1063_p5)
}
  0x2e   :  { %59 = dma.hbm_to_vmem [thread:$0]  %s1237_s3, 8192, %s54_s9, [#allocation9], %s1099_s28, %s1099_s28, %s1100_s29  }
  0x2f   :  { %1087 = dma.done.wait [#allocation3], 256  }
  0x30   :  { %1088 = vsyncadd [#allocation3], 4294967040 }
  0x31   :  { %1089 = dma.done.wait [#allocation6], 16512  }
  0x32   :  { %1090 = vsyncadd [#allocation6], 4294950784 }
  0x33   :  { %1091 = dma.done.wait [#allocation9], 8192  }
  0x34   :  { %1092 = vsyncadd [#allocation9], 4294959104  ;;  %v1103_v0 = vmov 0.0   ;;  %v197_v1 = vld [vmem:[#allocation5 + $0x3c8] sm:$0xff]  ;;  %v199_v2 = vld [vmem:[#allocation5 + $0x3d8] sm:$0xff]  ;;  %s1104_s15 = smov [#allocation10]  }
  0x35   :  { %310 = vmatprep.mubr.f32.mxu0 %v1103_v0  ;;  %387 = vmatprep.mubr.f32.mxu1 %v1103_v0  ;;  %v196_v3 = vld [vmem:[#allocation5 + $0x3c0] sm:$0xff]  ;;  %v198_v4 = vld [vmem:[#allocation5 + $0x3d0] sm:$0xff]  ;;  %v189_v5 = vld [vmem:[#allocation5 + $0x388] sm:$0xff]  ;;  %s846_s16 = sshll.u32 %s1104_s15, 4  ;;  %s847_s16 = int_to_ptr.vmem [resolvable:$true] %s846_s16 }
  0x36   :  { %246 = vmatprep.subr.mxu0 %v197_v1  ;;  %323 = vmatprep.subr.mxu1 %v199_v2  ;;  %v191_v6 = vld [vmem:[#allocation5 + $0x398] sm:$0xff]  ;;  %v188_v7 = vld [vmem:[#allocation5 + $0x380] sm:$0xff]  ;;  %v190_v8 = vld [vmem:[#allocation5 + $0x390] sm:$0xff]  ;;  %p1072_p7 = scmp.lt.s32.totalorder %s847_s16, %s847_s16 }
  0x37   :  { %247 = vmatpush1.msra.mxu0 %v196_v3  ;;  %324 = vmatpush1.msra.mxu1 %v198_v4  ;;  %v181_v9 = vld [vmem:[#allocation5 + $0x348] sm:$0xff]  ;;  %v183_v10 = vld [vmem:[#allocation5 + $0x358] sm:$0xff]  ;;  %v180_v11 = vld [vmem:[#allocation5 + $0x340] sm:$0xff] }
  0x38   :  { %248 = vmatprep.subr.mxu0 %v189_v5  ;;  %325 = vmatprep.subr.mxu1 %v191_v6  ;;  %v182_v12 = vld [vmem:[#allocation5 + $0x350] sm:$0xff]  ;;  %v173_v13 = vld [vmem:[#allocation5 + $0x308] sm:$0xff]  ;;  %v175_v14 = vld [vmem:[#allocation5 + $0x318] sm:$0xff] }
  0x39   :  { %249 = vmatpush1.msra.mxu0 %v188_v7  ;;  %326 = vmatpush1.msra.mxu1 %v190_v8  ;;  %v172_v15 = vld [vmem:[#allocation5 + $0x300] sm:$0xff]  ;;  %v174_v16 = vld [vmem:[#allocation5 + $0x310] sm:$0xff]  ;;  %v165_v17 = vld [vmem:[#allocation5 + $0x2c8] sm:$0xff] }
  0x3a   :  { %250 = vmatprep.subr.mxu0 %v181_v9  ;;  %327 = vmatprep.subr.mxu1 %v183_v10  ;;  %v167_v18 = vld [vmem:[#allocation5 + $0x2d8] sm:$0xff]  ;;  %v164_v19 = vld [vmem:[#allocation5 + $0x2c0] sm:$0xff]  ;;  %v166_v20 = vld [vmem:[#allocation5 + $0x2d0] sm:$0xff] }
  0x3b   :  { %251 = vmatpush1.msra.mxu0 %v180_v11  ;;  %328 = vmatpush1.msra.mxu1 %v182_v12  ;;  %v157_v21 = vld [vmem:[#allocation5 + $0x288] sm:$0xff]  ;;  %v159_v22 = vld [vmem:[#allocation5 + $0x298] sm:$0xff]  ;;  %v156_v23 = vld [vmem:[#allocation5 + $0x280] sm:$0xff] }
  0x3c   :  { %252 = vmatprep.subr.mxu0 %v173_v13  ;;  %329 = vmatprep.subr.mxu1 %v175_v14  ;;  %v158_v24 = vld [vmem:[#allocation5 + $0x290] sm:$0xff]  ;;  %v149_v25 = vld [vmem:[#allocation5 + $0x248] sm:$0xff]  ;;  %v151_v26 = vld [vmem:[#allocation5 + $0x258] sm:$0xff] }
  0x3d   :  { %253 = vmatpush1.msra.mxu0 %v172_v15  ;;  %330 = vmatpush1.msra.mxu1 %v174_v16  ;;  %v148_v27 = vld [vmem:[#allocation5 + $0x240] sm:$0xff]  ;;  %v150_v28 = vld [vmem:[#allocation5 + $0x250] sm:$0xff]  ;;  %v141_v29 = vld [vmem:[#allocation5 + $0x208] sm:$0xff] }
  0x3e   :  { %254 = vmatprep.subr.mxu0 %v165_v17  ;;  %331 = vmatprep.subr.mxu1 %v167_v18  ;;  %v143_v30 = vld [vmem:[#allocation5 + $0x218] sm:$0xff]  ;;  %v140_v31 = vld [vmem:[#allocation5 + $0x200] sm:$0xff]  ;;  %v142_v32 = vld [vmem:[#allocation5 + $0x210] sm:$0xff] }
  0x3f   :  { %255 = vmatpush1.msra.mxu0 %v164_v19  ;;  %332 = vmatpush1.msra.mxu1 %v166_v20  ;;  %v133_v33 = vld [vmem:[#allocation5 + $0x1c8] sm:$0xff]  ;;  %v135_v34 = vld [vmem:[#allocation5 + $0x1d8] sm:$0xff]  ;;  %v132_v35 = vld [vmem:[#allocation5 + $0x1c0] sm:$0xff] }
  0x40   :  { %256 = vmatprep.subr.mxu0 %v157_v21  ;;  %333 = vmatprep.subr.mxu1 %v159_v22  ;;  %v134_v36 = vld [vmem:[#allocation5 + $0x1d0] sm:$0xff]  ;;  %v125_v37 = vld [vmem:[#allocation5 + $0x188] sm:$0xff]  ;;  %v127_v38 = vld [vmem:[#allocation5 + $0x198] sm:$0xff] }
  0x41   :  { %257 = vmatpush1.msra.mxu0 %v156_v23  ;;  %334 = vmatpush1.msra.mxu1 %v158_v24  ;;  %v124_v39 = vld [vmem:[#allocation5 + $0x180] sm:$0xff]  ;;  %v126_v40 = vld [vmem:[#allocation5 + $0x190] sm:$0xff]  ;;  %v117_v41 = vld [vmem:[#allocation5 + $0x148] sm:$0xff] }
  0x42   :  { %258 = vmatprep.subr.mxu0 %v149_v25  ;;  %335 = vmatprep.subr.mxu1 %v151_v26  ;;  %v119_v42 = vld [vmem:[#allocation5 + $0x158] sm:$0xff]  ;;  %v116_v43 = vld [vmem:[#allocation5 + $0x140] sm:$0xff]  ;;  %v118_v44 = vld [vmem:[#allocation5 + $0x150] sm:$0xff] }
  0x43   :  { %259 = vmatpush1.msra.mxu0 %v148_v27  ;;  %336 = vmatpush1.msra.mxu1 %v150_v28  ;;  %v109_v45 = vld [vmem:[#allocation5 + $0x108] sm:$0xff]  ;;  %v111_v46 = vld [vmem:[#allocation5 + $0x118] sm:$0xff]  ;;  %v108_v47 = vld [vmem:[#allocation5 + $0x100] sm:$0xff] }
  0x44   :  { %260 = vmatprep.subr.mxu0 %v141_v29  ;;  %337 = vmatprep.subr.mxu1 %v143_v30  ;;  %v110_v48 = vld [vmem:[#allocation5 + $0x110] sm:$0xff]  ;;  %v101_v49 = vld [vmem:[#allocation5 + $0xc8] sm:$0xff]  ;;  %v103_v50 = vld [vmem:[#allocation5 + $0xd8] sm:$0xff] }
  0x45   :  { %261 = vmatpush1.msra.mxu0 %v140_v31  ;;  %338 = vmatpush1.msra.mxu1 %v142_v32  ;;  %v100_v51 = vld [vmem:[#allocation5 + $0xc0] sm:$0xff]  ;;  %v102_v52 = vld [vmem:[#allocation5 + $0xd0] sm:$0xff]  ;;  %v93_v53 = vld [vmem:[#allocation5 + $0x88] sm:$0xff] }
  0x46   :  { %262 = vmatprep.subr.mxu0 %v133_v33  ;;  %339 = vmatprep.subr.mxu1 %v135_v34  ;;  %v95_v54 = vld [vmem:[#allocation5 + $0x98] sm:$0xff]  ;;  %v92_v55 = vld [vmem:[#allocation5 + $0x80] sm:$0xff]  ;;  %v94_v56 = vld [vmem:[#allocation5 + $0x90] sm:$0xff] }
  0x47   :  { %263 = vmatpush1.msra.mxu0 %v132_v35  ;;  %340 = vmatpush1.msra.mxu1 %v134_v36  ;;  %v85_v57 = vld [vmem:[#allocation5 + $0x48] sm:$0xff]  ;;  %v87_v58 = vld [vmem:[#allocation5 + $0x58] sm:$0xff]  ;;  %v84_v59 = vld [vmem:[#allocation5 + $0x40] sm:$0xff] }
  0x48   :  { %264 = vmatprep.subr.mxu0 %v125_v37  ;;  %341 = vmatprep.subr.mxu1 %v127_v38  ;;  %v86_v60 = vld [vmem:[#allocation5 + $0x50] sm:$0xff]  ;;  %v77_v61 = vld [vmem:[#allocation5 + $0x8] sm:$0xff]  ;;  %v79_v62 = vld [vmem:[#allocation5 + $0x18] sm:$0xff] }
  0x49   :  { %265 = vmatpush1.msra.mxu0 %v124_v39  ;;  %342 = vmatpush1.msra.mxu1 %v126_v40  ;;  %v76_v63 = vld [vmem:[#allocation5] sm:$0xff]  ;;  %v78_v1 = vld [vmem:[#allocation5 + $0x10] sm:$0xff]  ;;  %v201_v3 = vld [vmem:[#allocation5 + $0x3e8] sm:$0xff] }
  0x4a   :  { %266 = vmatprep.subr.mxu0 %v117_v41  ;;  %343 = vmatprep.subr.mxu1 %v119_v42  ;;  %v1155_v2 = vld [vmem:[#allocation2] sm:$0xff]  ;;  %v203_v4 = vld [vmem:[#allocation5 + $0x3f8] sm:$0xff]  ;;  %v200_v5 = vld [vmem:[#allocation5 + $0x3e0] sm:$0xff] }
  0x4b   :  { %267 = vmatpush1.msra.mxu0 %v116_v43  ;;  %344 = vmatpush1.msra.mxu1 %v118_v44  ;;  %v193_v6 = vld [vmem:[#allocation5 + $0x3a8] sm:$0xff]  ;;  %v192_v7 = vld [vmem:[#allocation5 + $0x3a0] sm:$0xff]  ;;  %v202_v8 = vld [vmem:[#allocation5 + $0x3f0] sm:$0xff] }
  0x4c   :  { %268 = vmatprep.subr.mxu0 %v109_v45  ;;  %345 = vmatprep.subr.mxu1 %v111_v46  ;;  %v1160_v9 = vld [vmem:[#allocation2 + $0x8] sm:$0xff]  ;;  %v185_v10 = vld [vmem:[#allocation5 + $0x368] sm:$0xff]  ;;  %v184_v12 = vld [vmem:[#allocation5 + $0x360] sm:$0xff] }
  0x4d   :  { %269 = vmatpush1.msra.mxu0 %v108_v47  ;;  %346 = vmatpush1.msra.mxu1 %v110_v48  ;;  %v195_v11 = vld [vmem:[#allocation5 + $0x3b8] sm:$0xff]  ;;  %v194_v13 = vld [vmem:[#allocation5 + $0x3b0] sm:$0xff]  ;;  %v177_v14 = vld [vmem:[#allocation5 + $0x328] sm:$0xff] }
  0x4e   :  { %270 = vmatprep.subr.mxu0 %v101_v49  ;;  %347 = vmatprep.subr.mxu1 %v103_v50  ;;  %v187_v15 = vld [vmem:[#allocation5 + $0x378] sm:$0xff]  ;;  %v176_v16 = vld [vmem:[#allocation5 + $0x320] sm:$0xff]  ;;  %v186_v17 = vld [vmem:[#allocation5 + $0x370] sm:$0xff] }
  0x4f   :  { %271 = vmatpush1.msra.mxu0 %v100_v51  ;;  %348 = vmatpush1.msra.mxu1 %v102_v52  ;;  %v169_v18 = vld [vmem:[#allocation5 + $0x2e8] sm:$0xff]  ;;  %v179_v19 = vld [vmem:[#allocation5 + $0x338] sm:$0xff]  ;;  %v168_v20 = vld [vmem:[#allocation5 + $0x2e0] sm:$0xff] }
  0x50   :  { %272 = vmatprep.subr.mxu0 %v93_v53  ;;  %349 = vmatprep.subr.mxu1 %v95_v54  ;;  %v178_v21 = vld [vmem:[#allocation5 + $0x330] sm:$0xff]  ;;  %v161_v22 = vld [vmem:[#allocation5 + $0x2a8] sm:$0xff]  ;;  %v171_v23 = vld [vmem:[#allocation5 + $0x2f8] sm:$0xff] }
  0x51   :  { %273 = vmatpush1.msra.mxu0 %v92_v55  ;;  %350 = vmatpush1.msra.mxu1 %v94_v56  ;;  %v160_v24 = vld [vmem:[#allocation5 + $0x2a0] sm:$0xff]  ;;  %v170_v25 = vld [vmem:[#allocation5 + $0x2f0] sm:$0xff]  ;;  %v153_v26 = vld [vmem:[#allocation5 + $0x268] sm:$0xff] }
  0x52   :  { %274 = vmatprep.subr.mxu0 %v85_v57  ;;  %351 = vmatprep.subr.mxu1 %v87_v58  ;;  %v163_v27 = vld [vmem:[#allocation5 + $0x2b8] sm:$0xff]  ;;  %v152_v28 = vld [vmem:[#allocation5 + $0x260] sm:$0xff]  ;;  %v162_v29 = vld [vmem:[#allocation5 + $0x2b0] sm:$0xff] }
  0x53   :  { %275 = vmatpush1.msra.mxu0 %v84_v59  ;;  %352 = vmatpush1.msra.mxu1 %v86_v60  ;;  %v145_v30 = vld [vmem:[#allocation5 + $0x228] sm:$0xff]  ;;  %v155_v31 = vld [vmem:[#allocation5 + $0x278] sm:$0xff]  ;;  %v144_v32 = vld [vmem:[#allocation5 + $0x220] sm:$0xff] }
  0x54   :  { %276 = vmatprep.subr.mxu0 %v77_v61  ;;  %353 = vmatprep.subr.mxu1 %v79_v62  ;;  %v154_v33 = vld [vmem:[#allocation5 + $0x270] sm:$0xff]  ;;  %v137_v34 = vld [vmem:[#allocation5 + $0x1e8] sm:$0xff]  ;;  %v147_v35 = vld [vmem:[#allocation5 + $0x238] sm:$0xff] }
  0x55   :  { %277 = vmatpush1.msra.mxu0 %v76_v63  ;;  %354 = vmatpush1.msra.mxu1 %v78_v1  ;;  %v136_v36 = vld [vmem:[#allocation5 + $0x1e0] sm:$0xff]  ;;  %v146_v37 = vld [vmem:[#allocation5 + $0x230] sm:$0xff]  ;;  %v129_v38 = vld [vmem:[#allocation5 + $0x1a8] sm:$0xff] }
  0x56   :  { %311 = vmatmul.mubr.f32.vlgmr.msra.gmra.mxu0 %v1155_v2  ;;  %388 = vmatmul.mubr.f32.vlgmr.msra.gmra.mxu1 %v1155_v2  ;;  %v139_v39 = vld [vmem:[#allocation5 + $0x1f8] sm:$0xff]  ;;  %v128_v40 = vld [vmem:[#allocation5 + $0x1a0] sm:$0xff]  ;;  %v138_v41 = vld [vmem:[#allocation5 + $0x1f0] sm:$0xff] }
  0x57   :  { %400 = vmatprep.subr.mxu0 %v201_v3  ;;  %477 = vmatprep.subr.mxu1 %v203_v4  ;;  %v121_v42 = vld [vmem:[#allocation5 + $0x168] sm:$0xff]  ;;  %v131_v43 = vld [vmem:[#allocation5 + $0x1b8] sm:$0xff]  ;;  %v120_v44 = vld [vmem:[#allocation5 + $0x160] sm:$0xff] }
  0x58   :  { %401 = vmatpush1.msra.mxu0 %v200_v5  ;;  %316 = vmatprep.mubr.f32.mxu0 %v1103_v0  ;;  %v130_v45 = vld [vmem:[#allocation5 + $0x1b0] sm:$0xff]  ;;  %v113_v46 = vld [vmem:[#allocation5 + $0x128] sm:$0xff]  ;;  %v123_v47 = vld [vmem:[#allocation5 + $0x178] sm:$0xff] }
  0x59   :  { %402 = vmatprep.subr.mxu0 %v193_v6  ;;  %393 = vmatprep.mubr.f32.mxu1 %v1103_v0  ;;  %v112_v48 = vld [vmem:[#allocation5 + $0x120] sm:$0xff]  ;;  %v122_v49 = vld [vmem:[#allocation5 + $0x170] sm:$0xff]  ;;  %v105_v50 = vld [vmem:[#allocation5 + $0xe8] sm:$0xff] }
  0x5a   :  { %403 = vmatpush1.msra.mxu0 %v192_v7  ;;  %478 = vmatpush1.msra.mxu1 %v202_v8  ;;  %v115_v51 = vld [vmem:[#allocation5 + $0x138] sm:$0xff]  ;;  %v104_v52 = vld [vmem:[#allocation5 + $0xe0] sm:$0xff]  ;;  %v114_v53 = vld [vmem:[#allocation5 + $0x130] sm:$0xff] }
  0x5b   :  { %317 = vmatmul.mubr.f32.gmra.mxu0 %v1160_v9  ;;  %394 = vmatmul.mubr.f32.gmra.mxu1 %v1160_v9  ;;  %v97_v54 = vld [vmem:[#allocation5 + $0xa8] sm:$0xff]  ;;  %v107_v55 = vld [vmem:[#allocation5 + $0xf8] sm:$0xff]  ;;  %v96_v56 = vld [vmem:[#allocation5 + $0xa0] sm:$0xff] }
  0x5c   :  { %404 = vmatprep.subr.mxu0 %v185_v10  ;;  %479 = vmatprep.subr.mxu1 %v195_v11  ;;  %v106_v57 = vld [vmem:[#allocation5 + $0xf0] sm:$0xff]  ;;  %v89_v58 = vld [vmem:[#allocation5 + $0x68] sm:$0xff]  ;;  %v99_v59 = vld [vmem:[#allocation5 + $0xb8] sm:$0xff] }
  0x5d   :  { %405 = vmatpush1.msra.mxu0 %v184_v12  ;;  %480 = vmatpush1.msra.mxu1 %v194_v13  ;;  %v88_v60 = vld [vmem:[#allocation5 + $0x60] sm:$0xff]  ;;  %v98_v61 = vld [vmem:[#allocation5 + $0xb0] sm:$0xff]  ;;  %v81_v62 = vld [vmem:[#allocation5 + $0x28] sm:$0xff] }
  0x5e   :  { %406 = vmatprep.subr.mxu0 %v177_v14  ;;  %481 = vmatprep.subr.mxu1 %v187_v15  ;;  %v91_v63 = vld [vmem:[#allocation5 + $0x78] sm:$0xff]  ;;  %v80_v1 = vld [vmem:[#allocation5 + $0x20] sm:$0xff]  ;;  %v90_v3 = vld [vmem:[#allocation5 + $0x70] sm:$0xff] }
  0x5f   :  { %407 = vmatpush1.msra.mxu0 %v176_v16  ;;  %482 = vmatpush1.msra.mxu1 %v186_v17  ;;  %v83_v4 = vld [vmem:[#allocation5 + $0x38] sm:$0xff]  ;;  %v82_v5 = vld [vmem:[#allocation5 + $0x30] sm:$0xff]  ;;  %v649_v6 = vld [vmem:[#allocation8 + $0xf8] sm:$0xff] }
  0x60   :  { %408 = vmatprep.subr.mxu0 %v169_v18  ;;  %483 = vmatprep.subr.mxu1 %v179_v19  ;;  %v681_v7 = vld [vmem:[#allocation8 + $0x1f8] sm:$0xff]  ;;  %v648_v11 = vld [vmem:[#allocation8 + $0xf0] sm:$0xff]  ;;  %v647_v14 = vld [vmem:[#allocation8 + $0xe8] sm:$0xff] }
  0x61   :  { %409 = vmatpush1.msra.mxu0 %v168_v20  ;;  %484 = vmatpush1.msra.mxu1 %v178_v21  ;;  %v633_v8 = vld [vmem:[#allocation8 + $0x78] sm:$0xff]  ;;  %v680_v12 = vld [vmem:[#allocation8 + $0x1f0] sm:$0xff]  ;;  %v663_v15 = vld [vmem:[#allocation8 + $0x168] sm:$0xff] }
  0x62   :  { %410 = vmatprep.subr.mxu0 %v161_v22  ;;  %485 = vmatprep.subr.mxu1 %v171_v23  ;;  %v665_v10 = vld [vmem:[#allocation8 + $0x178] sm:$0xff]  ;;  %v632_v13 = vld [vmem:[#allocation8 + $0x70] sm:$0xff]  ;;  %v646_v16 = vld [vmem:[#allocation8 + $0xe0] sm:$0xff] }
  0x63   :  { %411 = vmatpush1.msra.mxu0 %v160_v24  ;;  %486 = vmatpush1.msra.mxu1 %v170_v25  ;;  %v678_v17 = vld [vmem:[#allocation8 + $0x1e0] sm:$0xff]  ;;  %v645_v20 = vld [vmem:[#allocation8 + $0xd8] sm:$0xff]  ;;  %v644_v24 = vld [vmem:[#allocation8 + $0xd0] sm:$0xff] }
  0x64   :  { %412 = vmatprep.subr.mxu0 %v153_v26  ;;  %487 = vmatprep.subr.mxu1 %v163_v27  ;;  %v630_v18 = vld [vmem:[#allocation8 + $0x60] sm:$0xff]  ;;  %v677_v21 = vld [vmem:[#allocation8 + $0x1d8] sm:$0xff]  ;;  %v676_v25 = vld [vmem:[#allocation8 + $0x1d0] sm:$0xff] }
  0x65   :  { %413 = vmatpush1.msra.mxu0 %v152_v28  ;;  %488 = vmatpush1.msra.mxu1 %v162_v29  ;;  %v662_v19 = vld [vmem:[#allocation8 + $0x160] sm:$0xff]  ;;  %v629_v22 = vld [vmem:[#allocation8 + $0x58] sm:$0xff]  ;;  %v628_v26 = vld [vmem:[#allocation8 + $0x50] sm:$0xff] }
  0x66   :  { %414 = vmatprep.subr.mxu0 %v145_v30  ;;  %489 = vmatprep.subr.mxu1 %v155_v31  ;;  %v661_v23 = vld [vmem:[#allocation8 + $0x158] sm:$0xff]  ;;  %v660_v27 = vld [vmem:[#allocation8 + $0x150] sm:$0xff]  ;;  %v643_v28 = vld [vmem:[#allocation8 + $0xc8] sm:$0xff] }
  0x67   :  { %415 = vmatpush1.msra.mxu0 %v144_v32  ;;  %490 = vmatpush1.msra.mxu1 %v154_v33  ;;  %v675_v29 = vld [vmem:[#allocation8 + $0x1c8] sm:$0xff]  ;;  %v642_v32 = vld [vmem:[#allocation8 + $0xc0] sm:$0xff] }
  0x68   :  { %416 = vmatprep.subr.mxu0 %v137_v34  ;;  %491 = vmatprep.subr.mxu1 %v147_v35  ;;  %v627_v30 = vld [vmem:[#allocation8 + $0x48] sm:$0xff]  ;;  %v674_v33 = vld [vmem:[#allocation8 + $0x1c0] sm:$0xff] }
  0x69   :  { %417 = vmatpush1.msra.mxu0 %v136_v36  ;;  %492 = vmatpush1.msra.mxu1 %v146_v37  ;;  %v659_v31 = vld [vmem:[#allocation8 + $0x148] sm:$0xff]  ;;  %v626_v34 = vld [vmem:[#allocation8 + $0x40] sm:$0xff]  ;;  %v641_v36 = vld [vmem:[#allocation8 + $0xb8] sm:$0xff] }
  0x6a   :  { %418 = vmatprep.subr.mxu0 %v129_v38  ;;  %493 = vmatprep.subr.mxu1 %v139_v39  ;;  %v658_v35 = vld [vmem:[#allocation8 + $0x140] sm:$0xff]  ;;  %v673_v37 = vld [vmem:[#allocation8 + $0x1b8] sm:$0xff] }
  0x6b   :  { %419 = vmatpush1.msra.mxu0 %v128_v40  ;;  %494 = vmatpush1.msra.mxu1 %v138_v41  ;;  %v625_v38 = vld [vmem:[#allocation8 + $0x38] sm:$0xff]  ;;  %v640_v40 = vld [vmem:[#allocation8 + $0xb0] sm:$0xff] }
  0x6c   :  { %420 = vmatprep.subr.mxu0 %v121_v42  ;;  %495 = vmatprep.subr.mxu1 %v131_v43  ;;  %v657_v39 = vld [vmem:[#allocation8 + $0x138] sm:$0xff]  ;;  %v672_v41 = vld [vmem:[#allocation8 + $0x1b0] sm:$0xff] }
  0x6d   :  { %421 = vmatpush1.msra.mxu0 %v120_v44  ;;  %496 = vmatpush1.msra.mxu1 %v130_v45  ;;  %v624_v42 = vld [vmem:[#allocation8 + $0x30] sm:$0xff]  ;;  %v639_v44 = vld [vmem:[#allocation8 + $0xa8] sm:$0xff] }
  0x6e   :  { %422 = vmatprep.subr.mxu0 %v113_v46  ;;  %497 = vmatprep.subr.mxu1 %v123_v47  ;;  %v656_v43 = vld [vmem:[#allocation8 + $0x130] sm:$0xff]  ;;  %v671_v45 = vld [vmem:[#allocation8 + $0x1a8] sm:$0xff] }
  0x6f   :  { %423 = vmatpush1.msra.mxu0 %v112_v48  ;;  %498 = vmatpush1.msra.mxu1 %v122_v49  ;;  %v623_v46 = vld [vmem:[#allocation8 + $0x28] sm:$0xff]  ;;  %v638_v48 = vld [vmem:[#allocation8 + $0xa0] sm:$0xff] }
  0x70   :  { %424 = vmatprep.subr.mxu0 %v105_v50  ;;  %499 = vmatprep.subr.mxu1 %v115_v51  ;;  %v655_v47 = vld [vmem:[#allocation8 + $0x128] sm:$0xff]  ;;  %v670_v49 = vld [vmem:[#allocation8 + $0x1a0] sm:$0xff] }
  0x71   :  { %425 = vmatpush1.msra.mxu0 %v104_v52  ;;  %500 = vmatpush1.msra.mxu1 %v114_v53  ;;  %v622_v50 = vld [vmem:[#allocation8 + $0x20] sm:$0xff]  ;;  %v637_v52 = vld [vmem:[#allocation8 + $0x98] sm:$0xff] }
  0x72   :  { %426 = vmatprep.subr.mxu0 %v97_v54  ;;  %501 = vmatprep.subr.mxu1 %v107_v55  ;;  %v654_v51 = vld [vmem:[#allocation8 + $0x120] sm:$0xff]  ;;  %v669_v53 = vld [vmem:[#allocation8 + $0x198] sm:$0xff] }
  0x73   :  { %427 = vmatpush1.msra.mxu0 %v96_v56  ;;  %502 = vmatpush1.msra.mxu1 %v106_v57  ;;  %v621_v54 = vld [vmem:[#allocation8 + $0x18] sm:$0xff]  ;;  %v636_v56 = vld [vmem:[#allocation8 + $0x90] sm:$0xff] }
  0x74   :  { %428 = vmatprep.subr.mxu0 %v89_v58  ;;  %503 = vmatprep.subr.mxu1 %v99_v59  ;;  %v653_v55 = vld [vmem:[#allocation8 + $0x118] sm:$0xff]  ;;  %v668_v57 = vld [vmem:[#allocation8 + $0x190] sm:$0xff] }
  0x75   :  { %429 = vmatpush1.msra.mxu0 %v88_v60  ;;  %504 = vmatpush1.msra.mxu1 %v98_v61  ;;  %v620_v58 = vld [vmem:[#allocation8 + $0x10] sm:$0xff]  ;;  %v635_v60 = vld [vmem:[#allocation8 + $0x88] sm:$0xff] }
  0x76   :  { %430 = vmatprep.subr.mxu0 %v81_v62  ;;  %505 = vmatprep.subr.mxu1 %v91_v63  ;;  %v652_v59 = vld [vmem:[#allocation8 + $0x110] sm:$0xff]  ;;  %v667_v61 = vld [vmem:[#allocation8 + $0x188] sm:$0xff] }
  0x77   :  { %431 = vmatpush1.msra.mxu0 %v80_v1  ;;  %464 = vmatprep.mubr.f32.mxu0 %v1103_v0  ;;  %v619_v62 = vld [vmem:[#allocation8 + $0x8] sm:$0xff]  ;;  %v634_v1 = vld [vmem:[#allocation8 + $0x80] sm:$0xff] }
  0x78   :  { %506 = vmatpush1.msra.mxu1 %v90_v3  ;;  %465 = vmatmul.mubr.f32.vlgmr.msra.gmra.mxu0 %v1155_v2  ;;  %v651_v63 = vld [vmem:[#allocation8 + $0x108] sm:$0xff]  ;;  %v666_v3 = vld [vmem:[#allocation8 + $0x180] sm:$0xff] }
  0x79   :  { %507 = vmatprep.subr.mxu1 %v83_v4  ;;  %541 = vmatprep.mubr.f32.mxu1 %v1103_v0  ;;  %v618_v4 = vld [vmem:[#allocation8] sm:$0xff] }
  0x7a   :  { %508 = vmatpush1.msra.mxu1 %v82_v5  ;;  %470 = vmatprep.mubr.f32.mxu0 %v1103_v0  ;;  %v650_v5 = vld [vmem:[#allocation8 + $0x100] sm:$0xff] }
  0x7b   :  { %542 = vmatmul.mubr.f32.vlgmr.msra.gmra.mxu1 %v1155_v2  ;;  %869 = vmatprep.subr.mxu0 %v649_v6  ;;  %v664_v2 = vld [vmem:[#allocation8 + $0x170] sm:$0xff]  ;;  %v206_v6 = vlaneseq }
  0x7c   :  { %471 = vmatmul.mubr.f32.gmra.mxu0 %v1160_v9  ;;  %547 = vmatprep.mubr.f32.mxu1 %v1103_v0  ;;  %v679_v0 = vld [vmem:[#allocation8 + $0x1e8] sm:$0xff] }
  0x7d   :  { %907 = vmatprep.subr.mxu1 %v681_v7  ;;  %870 = vmatpush3.msra.mxu0 %v633_v8  ;;  %v1173_v7 = vshrl.u32 %v206_v6, 7 }
  0x7e   :  { %908 = vmatpush3.msra.mxu1 %v665_v10  ;;  %871 = vmatprep.subr.mxu0 %v648_v11  ;;  %v1177_v11 = vld [vmem:[#allocation7] sm:$0xff] }
  0x7f   :  { %548 = vmatmul.mubr.f32.gmra.mxu1 %v1160_v9  ;;  %909 = vmatprep.subr.mxu1 %v680_v12  ;;  %v631_v9 = vld [vmem:[#allocation8 + $0x68] sm:$0xff]  ;;  %v208_v8 = vsub.s32 0, %v1173_v7  ;;  %v216_v10 = vsub.s32 2, %v1173_v7  ;;  %v212_v12 = vsub.s32 1, %v1173_v7 }
  0x80   :  { %872 = vmatpush3.msra.mxu0 %v632_v13  ;;  %910 = vmatpush3.msra.mxu1 %v664_v2  ;;  %v220_v13 = vsub.s32 3, %v1173_v7 }
  0x81   :  { %873 = vmatprep.subr.mxu0 %v647_v14  ;;  %911 = vmatprep.subr.mxu1 %v679_v0  ;;  %v209_v2 = vrot.slane %v1177_v11, %v208_v8  ;;  %v217_v14 = vrot.slane %v1177_v11, %v216_v10  ;;  %v213_v0 = vrot.slane %v1177_v11, %v212_v12 }
  0x82   :  { %874 = vmatpush3.msra.mxu0 %v631_v9  ;;  %912 = vmatpush3.msra.mxu1 %v663_v15  ;;  %v221_v9 = vrot.slane %v1177_v11, %v220_v13 }
  0x83   :  { %875 = vmatprep.subr.mxu0 %v646_v16  ;;  %913 = vmatprep.subr.mxu1 %v678_v17 }
  0x84   :  { %876 = vmatpush3.msra.mxu0 %v630_v18  ;;  %914 = vmatpush3.msra.mxu1 %v662_v19 }
  0x85   :  { %877 = vmatprep.subr.mxu0 %v645_v20  ;;  %915 = vmatprep.subr.mxu1 %v677_v21 }
  0x86   :  { %878 = vmatpush3.msra.mxu0 %v629_v22  ;;  %916 = vmatpush3.msra.mxu1 %v661_v23 }
  0x87   :  { %879 = vmatprep.subr.mxu0 %v644_v24  ;;  %917 = vmatprep.subr.mxu1 %v676_v25 }
  0x88   :  { %880 = vmatpush3.msra.mxu0 %v628_v26  ;;  %918 = vmatpush3.msra.mxu1 %v660_v27 }
  0x89   :  { %881 = vmatprep.subr.mxu0 %v643_v28  ;;  %919 = vmatprep.subr.mxu1 %v675_v29 }
  0x8a   :  { %882 = vmatpush3.msra.mxu0 %v627_v30  ;;  %920 = vmatpush3.msra.mxu1 %v659_v31 }
  0x8b   :  { %883 = vmatprep.subr.mxu0 %v642_v32  ;;  %921 = vmatprep.subr.mxu1 %v674_v33 }
  0x8c   :  { %884 = vmatpush3.msra.mxu0 %v626_v34  ;;  %922 = vmatpush3.msra.mxu1 %v658_v35 }
  0x8d   :  { %885 = vmatprep.subr.mxu0 %v641_v36  ;;  %923 = vmatprep.subr.mxu1 %v673_v37 }
  0x8e   :  { %886 = vmatpush3.msra.mxu0 %v625_v38  ;;  %924 = vmatpush3.msra.mxu1 %v657_v39 }
  0x8f   :  { %887 = vmatprep.subr.mxu0 %v640_v40  ;;  %925 = vmatprep.subr.mxu1 %v672_v41 }
  0x90   :  { %888 = vmatpush3.msra.mxu0 %v624_v42  ;;  %926 = vmatpush3.msra.mxu1 %v656_v43 }
  0x91   :  { %889 = vmatprep.subr.mxu0 %v639_v44  ;;  %927 = vmatprep.subr.mxu1 %v671_v45 }
  0x92   :  { %890 = vmatpush3.msra.mxu0 %v623_v46  ;;  %928 = vmatpush3.msra.mxu1 %v655_v47 }
  0x93   :  { %891 = vmatprep.subr.mxu0 %v638_v48  ;;  %929 = vmatprep.subr.mxu1 %v670_v49 }
  0x94   :  { %892 = vmatpush3.msra.mxu0 %v622_v50  ;;  %930 = vmatpush3.msra.mxu1 %v654_v51 }
  0x95   :  { %893 = vmatprep.subr.mxu0 %v637_v52  ;;  %931 = vmatprep.subr.mxu1 %v669_v53 }
  0x96   :  { %894 = vmatpush3.msra.mxu0 %v621_v54  ;;  %932 = vmatpush3.msra.mxu1 %v653_v55  ;;  %v224_v55 = vsub.s32 4, %v1173_v7 }
  0x97   :  { %895 = vmatprep.subr.mxu0 %v636_v56  ;;  %933 = vmatprep.subr.mxu1 %v668_v57  ;;  %v228_v56 = vsub.s32 5, %v1173_v7  ;;  %v232_v57 = vsub.s32 6, %v1173_v7 }
  0x98   :  { %896 = vmatpush3.msra.mxu0 %v620_v58  ;;  %934 = vmatpush3.msra.mxu1 %v652_v59  ;;  %v225_v58 = vrot.slane %v1177_v11, %v224_v55  ;;  %v236_v59 = vsub.s32 7, %v1173_v7 }
  0x99   :  { %897 = vmatprep.subr.mxu0 %v635_v60  ;;  %935 = vmatprep.subr.mxu1 %v667_v61  ;;  %v229_v60 = vrot.slane %v1177_v11, %v228_v56 }
  0x9a   :  { %898 = vmatpush3.msra.mxu0 %v619_v62  ;;  %936 = vmatpush3.msra.mxu1 %v651_v63  ;;  %v237_v8 = vrot.slane %v1177_v11, %v236_v59 }
  0x9b   :  { %899 = vmatprep.subr.mxu0 %v634_v1  ;;  %937 = vmatprep.subr.mxu1 %v666_v3  ;;  %v233_v1 = vrot.slane %v1177_v11, %v232_v57 }
  0x9c   :  { %900 = vmatpush3.msra.mxu0 %v618_v4  ;;  %938 = vmatpush3.msra.mxu1 %v650_v5 }
 0x116   :  { %v312_v15 = vpop.f32.mrf.mxu0  ;;  %v389_v16 = vpop.f32.mrf.mxu1 }
 0x117   :  { %v1185_v17 = vadd.f32 %v312_v15, %v209_v2  ;;  %v1187_v18 = vadd.f32 %v389_v16, %v217_v14 }
 0x118   :  { %v314_v19 = vpop.f32.mrf.mxu0  ;;  %v391_v20 = vpop.f32.mrf.mxu1 }
 0x119   :  { %v860_v21 = vmul.f32 -1.442695, %v1185_v17  ;;  %v862_v22 = vmul.f32 -1.442695, %v1187_v18  ;;  %v1191_v23 = vadd.f32 %v314_v19, %v213_v0  ;;  %v1193_v24 = vadd.f32 %v391_v20, %v221_v9 }
 0x11b   :  { %955 = vpow2.f32 %v860_v21  ;;  %v861_v25 = vmul.f32 -1.442695, %v1191_v23  ;;  %v863_v26 = vmul.f32 -1.442695, %v1193_v24  ;;  %v318_v27 = vpop.f32.mrf.mxu0  ;;  %v395_v28 = vpop.f32.mrf.mxu1 }
 0x11c   :  { %957 = vpow2.f32 %v862_v22  ;;  %v1197_v29 = vadd.f32 %v318_v27, %v209_v2  ;;  %v1199_v30 = vadd.f32 %v395_v28, %v217_v14 }
 0x11d   :  { %959 = vpow2.f32 %v861_v25  ;;  %v320_v31 = vpop.f32.mrf.mxu0  ;;  %v397_v32 = vpop.f32.mrf.mxu1 }
 0x11e   :  { %961 = vpow2.f32 %v863_v26  ;;  %v864_v33 = vmul.f32 -1.442695, %v1197_v29  ;;  %v866_v34 = vmul.f32 -1.442695, %v1199_v30  ;;  %v1203_v35 = vadd.f32 %v320_v31, %v213_v0 }
 0x11f   :  { %v1205_v36 = vadd.f32 %v397_v32, %v221_v9 }
 0x120   :  { %963 = vpow2.f32 %v864_v33  ;;  %v865_v37 = vmul.f32 -1.442695, %v1203_v35 }
 0x121   :  { %965 = vpow2.f32 %v866_v34  ;;  %v867_v38 = vmul.f32 -1.442695, %v1205_v36 }
 0x122   :  { %967 = vpow2.f32 %v865_v37 }
 0x123   :  { %969 = vpow2.f32 %v867_v38 }
 0x128   :  { %v956_v39 = vpop.eup %955 }
 0x129   :  { %v958_v40 = vpop.eup %957  ;;  %v578_v41 = vadd.f32 1.0, %v956_v39 }
 0x12a   :  { %v960_v42 = vpop.eup %959  ;;  %v580_v43 = vadd.f32 1.0, %v958_v40 }
 0x12b   :  { %v962_v44 = vpop.eup %961  ;;  %971 = vrcp.f32 %v578_v41  ;;  %v579_v45 = vadd.f32 1.0, %v960_v42 }
 0x12c   :  { %973 = vrcp.f32 %v580_v43  ;;  %v581_v46 = vadd.f32 1.0, %v962_v44 }
 0x12d   :  { %v964_v47 = vpop.eup %963  ;;  %975 = vrcp.f32 %v579_v45 }
 0x12e   :  { %v966_v48 = vpop.eup %965  ;;  %977 = vrcp.f32 %v581_v46  ;;  %v582_v49 = vadd.f32 1.0, %v964_v47 }
 0x12f   :  { %v968_v50 = vpop.eup %967  ;;  %v584_v51 = vadd.f32 1.0, %v966_v48 }
 0x130   :  { %v970_v52 = vpop.eup %969  ;;  %979 = vrcp.f32 %v582_v49  ;;  %v583_v53 = vadd.f32 1.0, %v968_v50 }
 0x131   :  { %981 = vrcp.f32 %v584_v51  ;;  %v585_v54 = vadd.f32 1.0, %v970_v52 }
 0x132   :  { %983 = vrcp.f32 %v583_v53 }
 0x133   :  { %985 = vrcp.f32 %v585_v54 }
 0x138   :  { %v972_v61 = vpop.eup %971  ;;  %v466_v62 = vpop.f32.mrf.mxu0 }
 0x139   :  { %v974_v63 = vpop.eup %973  ;;  %v602_v4 = vmul.f32 %v972_v61, %v1185_v17  ;;  %v467_v5 = vadd.f32 %v466_v62, %v225_v58 }
 0x13a   :  { %v976_v3 = vpop.eup %975  ;;  %v468_v6 = vpop.f32.mrf.mxu0  ;;  %v604_v9 = vmul.f32 %v974_v63, %v1187_v18 }
 0x13b   :  { %v978_v10 = vpop.eup %977  ;;  %v603_v12 = vmul.f32 %v976_v3, %v1191_v23  ;;  %v469_v13 = vadd.f32 %v468_v6, %v229_v60  ;;  %v543_v2 = vpop.f32.mrf.mxu1  ;;  %v610_v17 = vmul.f32 %v602_v4, %v467_v5 }
 0x13c   :  { %v605_v7 = vmul.f32 %v978_v10, %v1193_v24  ;;  %v472_v14 = vpop.f32.mrf.mxu0  ;;  %v544_v16 = vadd.f32 %v543_v2, %v233_v1 }
 0x13d   :  { %v980_v0 = vpop.eup %979  ;;  %v611_v15 = vmul.f32 %v603_v12, %v469_v13  ;;  %v545_v19 = vpop.f32.mrf.mxu1  ;;  %v473_v26 = vadd.f32 %v472_v14, %v225_v58 }
 0x13e   :  { %v982_v20 = vpop.eup %981  ;;  %v546_v21 = vadd.f32 %v545_v19, %v237_v8  ;;  %v474_v22 = vpop.f32.mrf.mxu0  ;;  %v606_v11 = vmul.f32 %v980_v0, %v1197_v29  ;;  %v612_v33 = vmul.f32 %v604_v9, %v544_v16 }
 0x13f   :  { %v984_v25 = vpop.eup %983  ;;  %v549_v23 = vpop.f32.mrf.mxu1  ;;  %753 = vmatprep.mubr.f32.mxu0 %v611_v15  ;;  %v475_v31 = vadd.f32 %v474_v22, %v229_v60  ;;  %v608_v18 = vmul.f32 %v982_v20, %v1199_v30  ;;  %v868_v30 = vld [vmem:[%s1238_s4] ss:$0 sm:$0xff]  ;;  %s1067_s4 = scalar_lea.vmem %s847_s16, 256 }
 0x140   :  { %v986_v27 = vpop.eup %985  ;;  %v607_v24 = vmul.f32 %v984_v25, %v1203_v35  ;;  %v613_v28 = vmul.f32 %v605_v7, %v546_v21  ;;  %754 = vmatmul.mubr.f32.vlgmr.msra.gmra.mxu0 %v610_v17  ;;  %v550_v34 = vadd.f32 %v549_v23, %v233_v1  ;;  %v614_v29 = vmul.f32 %v606_v11, %v473_v26  ;;  %p1068_p6 = scmp.ne.s32.totalorder %s847_s16, %s1067_s4  ;;  %p1073_p8 = scmp.lt.s32.totalorder %s1067_s4, %s1067_s4 }
 0x141   :  { %v609_v32 = vmul.f32 %v986_v27, %v1205_v36  ;;  %v551_v37 = vpop.f32.mrf.mxu1 }
 0x142   :  { %v615_v38 = vmul.f32 %v607_v24, %v475_v31  ;;  %v552_v39 = vadd.f32 %v551_v37, %v237_v8  ;;  %828 = vmatprep.mubr.f32.mxu1 %v613_v28  ;;  %v616_v41 = vmul.f32 %v608_v18, %v550_v34  ;;  %p1074_p9 = por %p1073_p8, %p1072_p7 }
 0x143   :  { %829 = vmatmul.mubr.f32.vlgmr.msra.gmra.mxu1 %v612_v33 }
 0x144   :  { %v617_v40 = vmul.f32 %v609_v32, %v552_v39  ;;  %758 = vmatprep.mubr.f32.mxu0 %v615_v38  ;;  %p1075_p10 = pnand %p1074_p9, %p1068_p6 }
 0x145   :  { %759 = vmatmul.mubr.f32.gmra.mxu0 %v614_v29 }
 0x146   :  { %833 = vmatprep.mubr.f32.mxu1 %v617_v40 }
 0x147   :  { %834 = vmatmul.mubr.f32.gmra.mxu1 %v616_v41 }
 0x200   :  { %v901_v35 = vpop.f32.mrf.mxu0 }
 0x202   :  { %v902_v36 = vpop.f32.mrf.mxu0 }
 0x203   :  { %v939_v42 = vpop.f32.mrf.mxu1  ;;  %v903_v43 = vadd.f32 %v902_v36, %v901_v35 }
 0x205   :  { %v756_v44 = vadd.f32 %v903_v43, %v868_v30  ;;  %v940_v45 = vpop.f32.mrf.mxu1  ;;  %v904_v46 = vpop.f32.mrf.mxu0 }
 0x206   :  { %v941_v47 = vadd.f32 %v940_v45, %v939_v42 }
 0x207   :  { %v942_v48 = vpop.f32.mrf.mxu1  ;;  %v905_v49 = vpop.f32.mrf.mxu0 }
 0x208   :  { %v831_v50 = vadd.f32 %v941_v47, %v756_v44  ;;  %v906_v51 = vadd.f32 %v905_v49, %v904_v46 }
 0x209   :  { %v943_v52 = vpop.f32.mrf.mxu1 }
 0x20a   :  { %839 = vst [vmem:[#allocation10] sm:$0xff] %v831_v50  ;;  %v761_v53 = vadd.f32 %v906_v51, %v868_v30  ;;  %v944_v54 = vadd.f32 %v943_v52, %v942_v48 }
 0x20c   :  { %v836_v55 = vadd.f32 %v944_v54, %v761_v53 }
 0x20e   :  { %840 = vst [vmem:[#allocation10 + $0x8] sm:$0xff] %v836_v55 }
 0x20f   :  { %1078 = shalt.err (!%p1075_p10)
}
 0x210   :  { %852 = dma.vmem_to_hbm [thread:$0]  %s847_s16, 256, %s1239_s5, [#allocation4], %s1099_s28, %s1099_s28, %s1100_s29  }
 0x211   :  { %1093 = dma.done.wait [#allocation4], 256  }
 0x212   :  { %1094 = vsyncadd [#allocation4], 4294967040 }
 0x213   :  { %856 = vsyncpa [#allocation3], 1 }
 0x214   :  { %857 = vsyncpa [#allocation6], 1 }
 0x215   :  { %858 = vsyncpa [#allocation9], 1 }
 0x216   :  { %859 = vsyncpa [#allocation4], 1 }

</bundles_post_ra>
